<compile_context>
chip_gen: v6e
topology: v6e:2x2x1
jax: 0.10.0
libtpu: 0.0.40
codegen_flags: <defaults>
</compile_context>

<pallas_src>
import math
import numpy as np
import jax
import jax.numpy as jnp
from jax.experimental import pallas as pl
from jax.experimental.pallas import tpu as pltpu

SIGMA = 3.0
CHANNELS = 3
PAD = math.ceil(SIGMA)          # 3
KSIZE = 2 * PAD + 1             # 7


def _gaussian_impulse_1d(size: int, sigma: float, truncate: float = 4.0) -> np.ndarray:
    """scipy.ndimage.gaussian_filter of a length-`size` delta (mode='reflect'),
    reimplemented in numpy so no scipy dependency is needed."""
    radius = int(truncate * sigma + 0.5)
    x = np.arange(-radius, radius + 1, dtype=np.float64)
    phi = np.exp(-0.5 * (x / sigma) ** 2)
    phi /= phi.sum()
    delta = np.zeros(size, dtype=np.float64)
    delta[size // 2] = 1.0
    # scipy 'reflect' boundary == numpy 'symmetric' padding (repeated reflection)
    padded = np.pad(delta, radius, mode="symmetric")
    return np.array(
        [np.dot(phi, padded[i:i + 2 * radius + 1]) for i in range(size)]
    )


def make_gaussian_weights(channels: int = CHANNELS) -> np.ndarray:
    """Depthwise filter bank (C, K, K): identical separable Gaussian per channel.
    Used only to build the XLA reference in __main__; the kernel bakes in g1."""
    g1 = _gaussian_impulse_1d(KSIZE, SIGMA)
    k2d = np.outer(g1, g1).astype(np.float32)
    return np.broadcast_to(k2d, (channels, KSIZE, KSIZE)).copy()


# ----------------------------- Pallas kernel ------------------------------ #

def _make_gauss_kernel(C: int, H: int, W: int, Wp: int, taps: tuple):
    """Build the separable-blur kernel with the Gaussian taps and all sizes
    baked in as compile-time constants."""
    K = len(taps)

    def kernel(x_ref, o_ref, tmp_ref):
        # x_ref:   (Hp, C*Wp)  one batch element, channels packed along lanes
        # o_ref:   (H,  C*W)   blurred output, channels packed along lanes
        # tmp_ref: (H,  C*Wp)  VMEM scratch holding the vertical-pass result

        # Vertical (sublane) pass: 7 MACs over the full lane-packed width.
        acc = taps[0] * x_ref[0:H, :]
        for ki in range(1, K):
            acc = acc + taps[ki] * x_ref[ki:ki + H, :]
        tmp_ref[...] = acc

        # Horizontal (lane) pass: 7 MACs per channel at static lane offsets.
        for c in range(C):
            base = c * Wp
            acc = taps[0] * tmp_ref[:, base:base + W]
            for kj in range(1, K):
                acc = acc + taps[kj] * tmp_ref[:, base + kj:base + kj + W]
            o_ref[:, c * W:(c + 1) * W] = acc.astype(o_ref.dtype)

    return kernel


def gaussian_layer(x: jax.Array, sigma: float = SIGMA) -> jax.Array:
    """Forward pass of GaussianLayer.

    x: (N, C, H, W) float32 -> (N, C, H, W) float32
    """
    N, C, H, W = x.shape
    pad = math.ceil(sigma)
    K = 2 * pad + 1
    Hp, Wp = H + 2 * pad, W + 2 * pad

    # Compile-time immediates for the separable Gaussian.
    taps = tuple(float(v) for v in _gaussian_impulse_1d(K, sigma))

    # ReflectionPad2d (PyTorch 'reflect' == jnp.pad mode='reflect') — glue.
    x_pad = jnp.pad(x, ((0, 0), (0, 0), (pad, pad), (pad, pad)), mode="reflect")

    # Lane-pack channels: (N, C, Hp, Wp) -> (N, Hp, C*Wp).
    x_packed = jnp.transpose(x_pad, (0, 2, 1, 3)).reshape(N, Hp, C * Wp)

    out_packed = pl.pallas_call(
        _make_gauss_kernel(C, H, W, Wp, taps),
        out_shape=jax.ShapeDtypeStruct((N, H, C * W), x.dtype),
        grid_spec=pltpu.PrefetchScalarGridSpec(
            num_scalar_prefetch=0,
            grid=(N,),
            in_specs=[
                pl.BlockSpec((None, Hp, C * Wp), lambda n: (n, 0, 0)),
            ],
            out_specs=pl.BlockSpec((None, H, C * W), lambda n: (n, 0, 0)),
            scratch_shapes=[pltpu.VMEM((H, C * Wp), jnp.float32)],
        ),
        compiler_params=pltpu.CompilerParams(
            dimension_semantics=("parallel",)
        ),
    )(x_packed)

    # Unpack back to NCHW.
    return jnp.transpose(out_packed.reshape(N, H, C, W), (0, 2, 1, 3))


# --------------------------------- main ----------------------------------- #

if __name__ == "__main__":
    key = jax.random.PRNGKey(0)
    N, C, H, W = 2, CHANNELS, 16, 16
    x = jax.random.normal(key, (N, C, H, W), dtype=jnp.float32)

    out = jax.block_until_ready(gaussian_layer(x))

    # Sanity check against XLA's depthwise conv on the same padded input.
    weights = jnp.asarray(make_gaussian_weights(C))              # (C, K, K)
    x_pad = jnp.pad(x, ((0, 0), (0, 0), (PAD, PAD), (PAD, PAD)), mode="reflect")
    ref = jax.lax.conv_general_dilated(
        x_pad,
        weights[:, None, :, :],                                  # (C, 1, K, K) OIHW grouped
        window_strides=(1, 1),
        padding="VALID",
        dimension_numbers=("NCHW", "OIHW", "NCHW"),
        feature_group_count=C,
    )

    assert out.shape == (N, C, H, W)
    assert jnp.allclose(out, ref, atol=1e-5, rtol=1e-5)

    print("KERNEL_OK")
</pallas_src>

<mosaic_0001>
module attributes {stable_mosaic.version = 11 : i64} {
  func.func @kernel(%arg0: i32, %arg1: memref<1x22x66xf32, #tpu.memory_space<vmem>>, %arg2: memref<1x16x48xf32, #tpu.memory_space<vmem>>, %arg3: memref<16x66xf32, #tpu.memory_space<vmem>>) attributes {dimension_semantics = [#tpu.dimension_semantics<parallel>], iteration_bounds = array<i64: 2>, scalar_prefetch = 0 : i64, scratch_operands = 1 : i64, tpu.core_type = #tpu.core_type<tc>, window_params = [{transform_indices = @transform_0, window_bounds = array<i64: 1, 22, 66>}, {transform_indices = @transform_1, window_bounds = array<i64: 1, 16, 48>}]} {
    %c0 = arith.constant 0 : index
    %c0_0 = arith.constant 0 : index
    %c0_1 = arith.constant 0 : index
    %0 = vector.load %arg1[%c0, %c0_0, %c0_1] : memref<1x22x66xf32, #tpu.memory_space<vmem>>, vector<1x16x66xf32>
    %1 = vector.shape_cast %0 : vector<1x16x66xf32> to vector<16x66xf32>
    %cst = arith.constant 0.136004984 : f32
    %2 = vector.broadcast %cst : f32 to vector<16x66xf32>
    %3 = arith.mulf %2, %1 : vector<16x66xf32>
    %c0_2 = arith.constant 0 : index
    %c1 = arith.constant 1 : index
    %c0_3 = arith.constant 0 : index
    %4 = vector.load %arg1[%c0_2, %c1, %c0_3] : memref<1x22x66xf32, #tpu.memory_space<vmem>>, vector<1x16x66xf32>
    %5 = vector.shape_cast %4 : vector<1x16x66xf32> to vector<16x66xf32>
    %cst_4 = arith.constant 0.141167626 : f32
    %6 = vector.broadcast %cst_4 : f32 to vector<16x66xf32>
    %7 = arith.mulf %6, %5 : vector<16x66xf32>
    %8 = arith.addf %3, %7 : vector<16x66xf32>
    %c0_5 = arith.constant 0 : index
    %c2 = arith.constant 2 : index
    %c0_6 = arith.constant 0 : index
    %9 = vector.load %arg1[%c0_5, %c2, %c0_6] : memref<1x22x66xf32, #tpu.memory_space<vmem>>, vector<1x16x66xf32>
    %10 = vector.shape_cast %9 : vector<1x16x66xf32> to vector<16x66xf32>
    %cst_7 = arith.constant 0.147594258 : f32
    %11 = vector.broadcast %cst_7 : f32 to vector<16x66xf32>
    %12 = arith.mulf %11, %10 : vector<16x66xf32>
    %13 = arith.addf %8, %12 : vector<16x66xf32>
    %c0_8 = arith.constant 0 : index
    %c3 = arith.constant 3 : index
    %c0_9 = arith.constant 0 : index
    %14 = vector.load %arg1[%c0_8, %c3, %c0_9] : memref<1x22x66xf32, #tpu.memory_space<vmem>>, vector<1x16x66xf32>
    %15 = vector.shape_cast %14 : vector<1x16x66xf32> to vector<16x66xf32>
    %cst_10 = arith.constant 0.150466293 : f32
    %16 = vector.broadcast %cst_10 : f32 to vector<16x66xf32>
    %17 = arith.mulf %16, %15 : vector<16x66xf32>
    %18 = arith.addf %13, %17 : vector<16x66xf32>
    %c0_11 = arith.constant 0 : index
    %c4 = arith.constant 4 : index
    %c0_12 = arith.constant 0 : index
    %19 = vector.load %arg1[%c0_11, %c4, %c0_12] : memref<1x22x66xf32, #tpu.memory_space<vmem>>, vector<1x16x66xf32>
    %20 = vector.shape_cast %19 : vector<1x16x66xf32> to vector<16x66xf32>
    %cst_13 = arith.constant 0.147594258 : f32
    %21 = vector.broadcast %cst_13 : f32 to vector<16x66xf32>
    %22 = arith.mulf %21, %20 : vector<16x66xf32>
    %23 = arith.addf %18, %22 : vector<16x66xf32>
    %c0_14 = arith.constant 0 : index
    %c5 = arith.constant 5 : index
    %c0_15 = arith.constant 0 : index
    %24 = vector.load %arg1[%c0_14, %c5, %c0_15] : memref<1x22x66xf32, #tpu.memory_space<vmem>>, vector<1x16x66xf32>
    %25 = vector.shape_cast %24 : vector<1x16x66xf32> to vector<16x66xf32>
    %cst_16 = arith.constant 0.141167626 : f32
    %26 = vector.broadcast %cst_16 : f32 to vector<16x66xf32>
    %27 = arith.mulf %26, %25 : vector<16x66xf32>
    %28 = arith.addf %23, %27 : vector<16x66xf32>
    %c0_17 = arith.constant 0 : index
    %c6 = arith.constant 6 : index
    %c0_18 = arith.constant 0 : index
    %29 = vector.load %arg1[%c0_17, %c6, %c0_18] : memref<1x22x66xf32, #tpu.memory_space<vmem>>, vector<1x16x66xf32>
    %30 = vector.shape_cast %29 : vector<1x16x66xf32> to vector<16x66xf32>
    %cst_19 = arith.constant 0.136004984 : f32
    %31 = vector.broadcast %cst_19 : f32 to vector<16x66xf32>
    %32 = arith.mulf %31, %30 : vector<16x66xf32>
    %33 = arith.addf %28, %32 : vector<16x66xf32>
    %c0_20 = arith.constant 0 : index
    %c0_21 = arith.constant 0 : index
    %34 = vector.load %arg3[%c0_20, %c0_21] : memref<16x66xf32, #tpu.memory_space<vmem>>, vector<16x66xf32>
    tpu.vector_store %arg3[%c0_20, %c0_21], %33 {strides = array<i32>} : memref<16x66xf32, #tpu.memory_space<vmem>>, vector<16x66xf32>,
    %c0_22 = arith.constant 0 : index
    %c0_23 = arith.constant 0 : index
    %35 = vector.load %arg3[%c0_22, %c0_23] : memref<16x66xf32, #tpu.memory_space<vmem>>, vector<16x16xf32>
    %cst_24 = arith.constant 0.136004984 : f32
    %36 = vector.broadcast %cst_24 : f32 to vector<16x16xf32>
    %37 = arith.mulf %36, %35 : vector<16x16xf32>
    %c0_25 = arith.constant 0 : index
    %c1_26 = arith.constant 1 : index
    %38 = vector.load %arg3[%c0_25, %c1_26] : memref<16x66xf32, #tpu.memory_space<vmem>>, vector<16x16xf32>
    %cst_27 = arith.constant 0.141167626 : f32
    %39 = vector.broadcast %cst_27 : f32 to vector<16x16xf32>
    %40 = arith.mulf %39, %38 : vector<16x16xf32>
    %41 = arith.addf %37, %40 : vector<16x16xf32>
    %c0_28 = arith.constant 0 : index
    %c2_29 = arith.constant 2 : index
    %42 = vector.load %arg3[%c0_28, %c2_29] : memref<16x66xf32, #tpu.memory_space<vmem>>, vector<16x16xf32>
    %cst_30 = arith.constant 0.147594258 : f32
    %43 = vector.broadcast %cst_30 : f32 to vector<16x16xf32>
    %44 = arith.mulf %43, %42 : vector<16x16xf32>
    %45 = arith.addf %41, %44 : vector<16x16xf32>
    %c0_31 = arith.constant 0 : index
    %c3_32 = arith.constant 3 : index
    %46 = vector.load %arg3[%c0_31, %c3_32] : memref<16x66xf32, #tpu.memory_space<vmem>>, vector<16x16xf32>
    %cst_33 = arith.constant 0.150466293 : f32
    %47 = vector.broadcast %cst_33 : f32 to vector<16x16xf32>
    %48 = arith.mulf %47, %46 : vector<16x16xf32>
    %49 = arith.addf %45, %48 : vector<16x16xf32>
    %c0_34 = arith.constant 0 : index
    %c4_35 = arith.constant 4 : index
    %50 = vector.load %arg3[%c0_34, %c4_35] : memref<16x66xf32, #tpu.memory_space<vmem>>, vector<16x16xf32>
    %cst_36 = arith.constant 0.147594258 : f32
    %51 = vector.broadcast %cst_36 : f32 to vector<16x16xf32>
    %52 = arith.mulf %51, %50 : vector<16x16xf32>
    %53 = arith.addf %49, %52 : vector<16x16xf32>
    %c0_37 = arith.constant 0 : index
    %c5_38 = arith.constant 5 : index
    %54 = vector.load %arg3[%c0_37, %c5_38] : memref<16x66xf32, #tpu.memory_space<vmem>>, vector<16x16xf32>
    %cst_39 = arith.constant 0.141167626 : f32
    %55 = vector.broadcast %cst_39 : f32 to vector<16x16xf32>
    %56 = arith.mulf %55, %54 : vector<16x16xf32>
    %57 = arith.addf %53, %56 : vector<16x16xf32>
    %c0_40 = arith.constant 0 : index
    %c6_41 = arith.constant 6 : index
    %58 = vector.load %arg3[%c0_40, %c6_41] : memref<16x66xf32, #tpu.memory_space<vmem>>, vector<16x16xf32>
    %cst_42 = arith.constant 0.136004984 : f32
    %59 = vector.broadcast %cst_42 : f32 to vector<16x16xf32>
    %60 = arith.mulf %59, %58 : vector<16x16xf32>
    %61 = arith.addf %57, %60 : vector<16x16xf32>
    %c0_43 = arith.constant 0 : index
    %c0_44 = arith.constant 0 : index
    %c0_45 = arith.constant 0 : index
    %62 = vector.load %arg2[%c0_43, %c0_44, %c0_45] : memref<1x16x48xf32, #tpu.memory_space<vmem>>, vector<1x16x16xf32>
    %63 = vector.shape_cast %62 : vector<1x16x16xf32> to vector<16x16xf32>
    %64 = vector.shape_cast %61 : vector<16x16xf32> to vector<1x16x16xf32>
    tpu.vector_store %arg2[%c0_43, %c0_44, %c0_45], %64 {strides = array<i32>} : memref<1x16x48xf32, #tpu.memory_space<vmem>>, vector<1x16x16xf32>,
    %c0_46 = arith.constant 0 : index
    %c22 = arith.constant 22 : index
    %65 = vector.load %arg3[%c0_46, %c22] : memref<16x66xf32, #tpu.memory_space<vmem>>, vector<16x16xf32>
    %cst_47 = arith.constant 0.136004984 : f32
    %66 = vector.broadcast %cst_47 : f32 to vector<16x16xf32>
    %67 = arith.mulf %66, %65 : vector<16x16xf32>
    %c0_48 = arith.constant 0 : index
    %c23 = arith.constant 23 : index
    %68 = vector.load %arg3[%c0_48, %c23] : memref<16x66xf32, #tpu.memory_space<vmem>>, vector<16x16xf32>
    %cst_49 = arith.constant 0.141167626 : f32
    %69 = vector.broadcast %cst_49 : f32 to vector<16x16xf32>
    %70 = arith.mulf %69, %68 : vector<16x16xf32>
    %71 = arith.addf %67, %70 : vector<16x16xf32>
    %c0_50 = arith.constant 0 : index
    %c24 = arith.constant 24 : index
    %72 = vector.load %arg3[%c0_50, %c24] : memref<16x66xf32, #tpu.memory_space<vmem>>, vector<16x16xf32>
    %cst_51 = arith.constant 0.147594258 : f32
    %73 = vector.broadcast %cst_51 : f32 to vector<16x16xf32>
    %74 = arith.mulf %73, %72 : vector<16x16xf32>
    %75 = arith.addf %71, %74 : vector<16x16xf32>
    %c0_52 = arith.constant 0 : index
    %c25 = arith.constant 25 : index
    %76 = vector.load %arg3[%c0_52, %c25] : memref<16x66xf32, #tpu.memory_space<vmem>>, vector<16x16xf32>
    %cst_53 = arith.constant 0.150466293 : f32
    %77 = vector.broadcast %cst_53 : f32 to vector<16x16xf32>
    %78 = arith.mulf %77, %76 : vector<16x16xf32>
    %79 = arith.addf %75, %78 : vector<16x16xf32>
    %c0_54 = arith.constant 0 : index
    %c26 = arith.constant 26 : index
    %80 = vector.load %arg3[%c0_54, %c26] : memref<16x66xf32, #tpu.memory_space<vmem>>, vector<16x16xf32>
    %cst_55 = arith.constant 0.147594258 : f32
    %81 = vector.broadcast %cst_55 : f32 to vector<16x16xf32>
    %82 = arith.mulf %81, %80 : vector<16x16xf32>
    %83 = arith.addf %79, %82 : vector<16x16xf32>
    %c0_56 = arith.constant 0 : index
    %c27 = arith.constant 27 : index
    %84 = vector.load %arg3[%c0_56, %c27] : memref<16x66xf32, #tpu.memory_space<vmem>>, vector<16x16xf32>
    %cst_57 = arith.constant 0.141167626 : f32
    %85 = vector.broadcast %cst_57 : f32 to vector<16x16xf32>
    %86 = arith.mulf %85, %84 : vector<16x16xf32>
    %87 = arith.addf %83, %86 : vector<16x16xf32>
    %c0_58 = arith.constant 0 : index
    %c28 = arith.constant 28 : index
    %88 = vector.load %arg3[%c0_58, %c28] : memref<16x66xf32, #tpu.memory_space<vmem>>, vector<16x16xf32>
    %cst_59 = arith.constant 0.136004984 : f32
    %89 = vector.broadcast %cst_59 : f32 to vector<16x16xf32>
    %90 = arith.mulf %89, %88 : vector<16x16xf32>
    %91 = arith.addf %87, %90 : vector<16x16xf32>
    %c0_60 = arith.constant 0 : index
    %c0_61 = arith.constant 0 : index
    %c16 = arith.constant 16 : index
    %92 = vector.load %arg2[%c0_60, %c0_61, %c16] : memref<1x16x48xf32, #tpu.memory_space<vmem>>, vector<1x16x16xf32>
    %93 = vector.shape_cast %92 : vector<1x16x16xf32> to vector<16x16xf32>
    %94 = vector.shape_cast %91 : vector<16x16xf32> to vector<1x16x16xf32>
    tpu.vector_store %arg2[%c0_60, %c0_61, %c16], %94 {strides = array<i32>} : memref<1x16x48xf32, #tpu.memory_space<vmem>>, vector<1x16x16xf32>,
    %c0_62 = arith.constant 0 : index
    %c44 = arith.constant 44 : index
    %95 = vector.load %arg3[%c0_62, %c44] : memref<16x66xf32, #tpu.memory_space<vmem>>, vector<16x16xf32>
    %cst_63 = arith.constant 0.136004984 : f32
    %96 = vector.broadcast %cst_63 : f32 to vector<16x16xf32>
    %97 = arith.mulf %96, %95 : vector<16x16xf32>
    %c0_64 = arith.constant 0 : index
    %c45 = arith.constant 45 : index
    %98 = vector.load %arg3[%c0_64, %c45] : memref<16x66xf32, #tpu.memory_space<vmem>>, vector<16x16xf32>
    %cst_65 = arith.constant 0.141167626 : f32
    %99 = vector.broadcast %cst_65 : f32 to vector<16x16xf32>
    %100 = arith.mulf %99, %98 : vector<16x16xf32>
    %101 = arith.addf %97, %100 : vector<16x16xf32>
    %c0_66 = arith.constant 0 : index
    %c46 = arith.constant 46 : index
    %102 = vector.load %arg3[%c0_66, %c46] : memref<16x66xf32, #tpu.memory_space<vmem>>, vector<16x16xf32>
    %cst_67 = arith.constant 0.147594258 : f32
    %103 = vector.broadcast %cst_67 : f32 to vector<16x16xf32>
    %104 = arith.mulf %103, %102 : vector<16x16xf32>
    %105 = arith.addf %101, %104 : vector<16x16xf32>
    %c0_68 = arith.constant 0 : index
    %c47 = arith.constant 47 : index
    %106 = vector.load %arg3[%c0_68, %c47] : memref<16x66xf32, #tpu.memory_space<vmem>>, vector<16x16xf32>
    %cst_69 = arith.constant 0.150466293 : f32
    %107 = vector.broadcast %cst_69 : f32 to vector<16x16xf32>
    %108 = arith.mulf %107, %106 : vector<16x16xf32>
    %109 = arith.addf %105, %108 : vector<16x16xf32>
    %c0_70 = arith.constant 0 : index
    %c48 = arith.constant 48 : index
    %110 = vector.load %arg3[%c0_70, %c48] : memref<16x66xf32, #tpu.memory_space<vmem>>, vector<16x16xf32>
    %cst_71 = arith.constant 0.147594258 : f32
    %111 = vector.broadcast %cst_71 : f32 to vector<16x16xf32>
    %112 = arith.mulf %111, %110 : vector<16x16xf32>
    %113 = arith.addf %109, %112 : vector<16x16xf32>
    %c0_72 = arith.constant 0 : index
    %c49 = arith.constant 49 : index
    %114 = vector.load %arg3[%c0_72, %c49] : memref<16x66xf32, #tpu.memory_space<vmem>>, vector<16x16xf32>
    %cst_73 = arith.constant 0.141167626 : f32
    %115 = vector.broadcast %cst_73 : f32 to vector<16x16xf32>
    %116 = arith.mulf %115, %114 : vector<16x16xf32>
    %117 = arith.addf %113, %116 : vector<16x16xf32>
    %c0_74 = arith.constant 0 : index
    %c50 = arith.constant 50 : index
    %118 = vector.load %arg3[%c0_74, %c50] : memref<16x66xf32, #tpu.memory_space<vmem>>, vector<16x16xf32>
    %cst_75 = arith.constant 0.136004984 : f32
    %119 = vector.broadcast %cst_75 : f32 to vector<16x16xf32>
    %120 = arith.mulf %119, %118 : vector<16x16xf32>
    %121 = arith.addf %117, %120 : vector<16x16xf32>
    %c0_76 = arith.constant 0 : index
    %c0_77 = arith.constant 0 : index
    %c32 = arith.constant 32 : index
    %122 = vector.load %arg2[%c0_76, %c0_77, %c32] : memref<1x16x48xf32, #tpu.memory_space<vmem>>, vector<1x16x16xf32>
    %123 = vector.shape_cast %122 : vector<1x16x16xf32> to vector<16x16xf32>
    %124 = vector.shape_cast %121 : vector<16x16xf32> to vector<1x16x16xf32>
    tpu.vector_store %arg2[%c0_76, %c0_77, %c32], %124 {strides = array<i32>} : memref<1x16x48xf32, #tpu.memory_space<vmem>>, vector<1x16x16xf32>,
    return
  }
  func.func @transform_0(%arg0: i32) -> (i32, i32, i32) {
    %c0_i32 = arith.constant 0 : i32
    %c0_i32_0 = arith.constant 0 : i32
    %c0_i32_1 = arith.constant 0 : i32
    return %arg0, %c0_i32, %c0_i32_0 : i32, i32, i32
  }
  func.func @transform_1(%arg0: i32) -> (i32, i32, i32) {
    %c0_i32 = arith.constant 0 : i32
    %c0_i32_0 = arith.constant 0 : i32
    %c0_i32_1 = arith.constant 0 : i32
    return %arg0, %c0_i32, %c0_i32_0 : i32, i32, i32
  }
}

</mosaic_0001>

<bundles_post_ra>
// kernel: tpu_custom_call.1
= control target key start
LH: loop header
LB: loop body
LE: loop exit
PB: predicated region body
PF: predicated region fallthrough
CT: control target
= control target key end

     0   :  { %6 = vsyncpa [#allocation4], 0  ;;  %s738_s0 = inlined_call_operand.vmem [shape: f32[2,22,66], index: 0, kind: input, shape index: {}]   ;;  %s739_s1 = inlined_call_operand.hbm [shape: f32[2,16,48], index: 1, kind: output, shape index: {}]  }
   0x1   :  { %8 = vsyncpa [#allocation4 + $0x1], 0  ;;  %s600_s6 = smov 0   ;;  %s602_s7 = smov 0  }
   0x2   :  { %s604_s8 = smov 0   ;;  %s606_s9 = smov 0  }
   0x3 LB: > { %s621_s10 = sadd.s32 4294967295, %s578_s9   ;;  %s457_s11 = sadd.s32 4294967294, %s578_s9   ;;  %s578_s9 = sphi %s606_s9, %s745_s9   ;;  %s574_s8 = sphi %s604_s8, %s744_s8   ;;  %s570_s7 = sphi %s602_s7, %s743_s7   ;;  %s566_s6 = sphi %s600_s6, %s742_s6  }
   0x4   : > { %s625_s12 = sadd.s32 1, %s578_s9   ;;  %s47_s13 = sadd.s32 1, %s574_s8 }
   0x5   : > { %s44_s14 = ssub.s32 %s578_s9, %s625_s12  ;;  %p57_p0 = scmp.ne.s32.totalorder %s574_s8, %s570_s7 }
   0x6   : > { %p45_p1 = scmp.eq.s32.totalorder %s44_s14, 0  ;;  %p58_p2 = scmp.eq.s32.totalorder %s621_s10, 1 }
   0x7   : > { %p63_p3 = scmp.ne.s32.totalorder %s570_s7, %s566_s6  ;;  %p64_p4 = scmp.eq.s32.totalorder %s457_s11, 1 }
   0x8   : > { %s636_s15 = scalar_select %p45_p1, %s574_s8, %s47_s13  }
   0x9   : > { %p638_p5 = por %p58_p2, %p57_p0  ;;  %p642_p6 = por %p64_p4, %p63_p3 }
   0xa   : > { %p460_p7 = scmp.ge.s32.totalorder %s578_s9, 1  ;;  %p90_p8 = scmp.lt.s32.totalorder %s578_s9, 3 }
   0xc   : > { %p91_p9 = pnand %p460_p7, %p90_p8 }
   0xd   : > { %p110_p10 = scmp.lt.s32.totalorder (!%p91_p9), %s621_s10, 1  ;;  %s580_s23 = smov (!%p91_p9), 127  }
   0xe   : > { %94 = sbr.rel (%p91_p9) target bundleno = 340 (0x154), region = 24  ;;  %s581_s24 = smov (!%p91_p9), 126  }
   0xf   : > { %s582_s25 = smov (!%p91_p9), 125   ;;  %s583_s26 = smov (!%p91_p9), 124  }
  0x10   : > { %s584_s27 = smov (!%p91_p9), 123   ;;  %s585_s28 = smov (!%p91_p9), 122  }
  0x11   : > { %s586_s29 = smov (!%p91_p9), 116   ;;  %s107_s30 = sand.u32 (!%p91_p9), 1, %s570_s7  }
  0x12   : > { %s461_s2 = sshll.u32 (!%p91_p9), %s107_s30, 4  ;;  %s468_s4 = sshll.u32 (!%p91_p9), %s621_s10, 8 }
  0x13   : > { %s111_s18 = scalar_select %p110_p10, %s621_s10, 1  ;;  %vm155_vm0 = vcmask 539648   ;;  %vm224_vm1 = vcmask 130048   ;;  %vm301_vm2 = vcmask 261248   ;;  %vm378_vm3 = vcmask 392448  }
  0x14   : > { %s109_s3 = scalar_lea.vmem [#allocation3], %s461_s2  ;;  %s694_s14 = scalar_lea.hbm %s739_s1, %s468_s4 }
  0x15   : > { %s469_s19 = smul.u32 24, %s111_s18  ;;  %s395_s5 = sshll.u32 %s109_s3, 4  ;;  %s696_s5 = int_to_ptr.vmem [resolvable:$true] %s395_s5 }
  0x16   : > { %s698_s10 = scalar_lea.sflag [#allocation4], %s107_s30  ;;  %s518_s18 = scalar_lea.vmem %s696_s5, 256 }
  0x17   : > { %s114_s22 = scalar_lea.vmem %s738_s0, %s469_s19  ;;  %p519_p11 = scmp.ne.s32.totalorder %s696_s5, %s518_s18 }
  0x18   : > { %v115_v0 = vld [vmem:[%s114_s22] sm:$0xff]  ;;  %v116_v1 = vld [vmem:[%s114_s22 + $0x8] sm:$0xff]  ;;  %s587_s19 = smov [#allocation3]  }
  0x19   : > { %v119_v2 = vld [vmem:[%s114_s22 + $0x1] sm:$0xff]  ;;  %v117_v3 = vmul.f32 0.13600498, %v115_v0  ;;  %v118_v4 = vmul.f32 0.13600498, %v116_v1  ;;  %v120_v5 = vld [vmem:[%s114_s22 + $0x9] sm:$0xff]  ;;  %p520_p12 = pnand %p519_p11, %p638_p5 }
  0x1a   : > { %v125_v6 = vld [vmem:[%s114_s22 + $0x2] sm:$0xff]  ;;  %v121_v7 = vmul.f32 0.14116763, %v119_v2  ;;  %v122_v8 = vmul.f32 0.14116763, %v120_v5  ;;  %v126_v9 = vld [vmem:[%s114_s22 + $0xa] sm:$0xff] }
  0x1b   : > { %v131_v10 = vld [vmem:[%s114_s22 + $0x3] sm:$0xff]  ;;  %v127_v11 = vmul.f32 0.14759426, %v125_v6  ;;  %v128_v12 = vmul.f32 0.14759426, %v126_v9  ;;  %v132_v13 = vld [vmem:[%s114_s22 + $0xb] sm:$0xff]  ;;  %p521_p13 = pneg %p520_p12 }
  0x1c   : > { %v137_v14 = vld [vmem:[%s114_s22 + $0x4] sm:$0xff]  ;;  %v123_v15 = vadd.f32 %v121_v7, %v117_v3  ;;  %v124_v16 = vadd.f32 %v122_v8, %v118_v4  ;;  %v133_v17 = vmul.f32 0.1504663, %v131_v10  ;;  %v134_v18 = vmul.f32 0.1504663, %v132_v13  ;;  %v138_v19 = vld [vmem:[%s114_s22 + $0xc] sm:$0xff] }
  0x1d   : > { %v143_v20 = vld [vmem:[%s114_s22 + $0x5] sm:$0xff]  ;;  %v144_v21 = vld [vmem:[%s114_s22 + $0xd] sm:$0xff]  ;;  %v139_v24 = vmul.f32 0.14759426, %v137_v14  ;;  %v140_v25 = vmul.f32 0.14759426, %v138_v19 }
  0x1e   : > { %v129_v22 = vadd.f32 %v127_v11, %v123_v15  ;;  %v130_v23 = vadd.f32 %v128_v12, %v124_v16  ;;  %v149_v26 = vld [vmem:[%s114_s22 + $0x6] sm:$0xff]  ;;  %v150_v27 = vld [vmem:[%s114_s22 + $0xe] sm:$0xff]  ;;  %v145_v30 = vmul.f32 0.14116763, %v143_v20  ;;  %v146_v31 = vmul.f32 0.14116763, %v144_v21 }
  0x1f   : > { %v151_v34 = vmul.f32 0.13600498, %v149_v26  ;;  %v152_v35 = vmul.f32 0.13600498, %v150_v27  ;;  %s522_s20 = sshll.u32 %s587_s19, 4  ;;  %s523_s20 = int_to_ptr.vmem [resolvable:$false] %s522_s20 }
  0x20   : > { %v135_v28 = vadd.f32 %v133_v17, %v129_v22  ;;  %v136_v29 = vadd.f32 %v134_v18, %v130_v23  ;;  %s524_s21 = scalar_lea.vmem %s523_s20, 512  ;;  %p525_p0 = scmp.lt.s32.totalorder %s696_s5, %s523_s20 }
  0x21   : > { %p526_p1 = scmp.lt.s32.totalorder %s524_s21, %s518_s18 }
  0x22   : > { %v141_v32 = vadd.f32 %v139_v24, %v135_v28  ;;  %v142_v33 = vadd.f32 %v140_v25, %v136_v29 }
  0x23   : > { %p527_p2 = por %p526_p1, %p525_p0 }
  0x24   : > { %v147_v36 = vadd.f32 %v145_v30, %v141_v32  ;;  %v148_v37 = vadd.f32 %v146_v31, %v142_v33 }
  0x25   : > { %p528_p3 = pnand %p527_p2, %p521_p13 }
  0x26   : > { %v153_v38 = vadd.f32 %v151_v34, %v147_v36  ;;  %v154_v39 = vadd.f32 %v152_v35, %v148_v37 }
  0x28   : > { %156 = vst.msk [vmem:[#allocation2] sm:$0xff] %vm155_vm0, %v153_v38  ;;  %157 = vst.msk [vmem:[#allocation2 + $0x8] sm:$0xff] %vm155_vm0, %v154_v39 }
  0x2f   : > { %v304_v40 = vld [vmem:[#allocation2] sm:$0xff]  ;;  %v305_v41 = vld [vmem:[#allocation2 + $0x8] sm:$0xff] }
  0x30   : > { %v308_v42 = vmul.f32 0.14116763, %v304_v40  ;;  %v309_v43 = vmul.f32 0.14116763, %v305_v41  ;;  %v244_v44 = vmul.f32 0.14759426, %v305_v41 }
  0x31   : > { %v243_v45 = vmul.f32 0.14759426, %v304_v40  ;;  %v256_v46 = vmul.f32 0.1504663, %v305_v41  ;;  %v255_v47 = vmul.f32 0.1504663, %v304_v40 }
  0x32   : > { %312 = vrot.lane.b32.xlu1 %v308_v42, %s580_s23  ;;  %235 = vrot.lane.b32.xlu0 %v308_v42, %s580_s23  ;;  %v661_v48 = vmul.f32 0.13600498, %v305_v41  ;;  %v663_v49 = vmul.f32 0.13600498, %v304_v40 }
  0x36   : > { %314 = vrot.lane.b32.xlu1 %v309_v43, %s580_s23  ;;  %237 = vrot.lane.b32.xlu0 %v309_v43, %s580_s23 }
  0x3a   : > { %249 = vrot.lane.b32.xlu1 %v244_v44, %s581_s24  ;;  %247 = vrot.lane.b32.xlu0 %v243_v45, %s581_s24 }
  0x3e   : > { %326 = vrot.lane.b32.xlu1 %v244_v44, %s581_s24  ;;  %324 = vrot.lane.b32.xlu0 %v243_v45, %s581_s24 }
  0x42   : > { %261 = vrot.lane.b32.xlu1 %v256_v46, %s582_s25  ;;  %259 = vrot.lane.b32.xlu0 %v255_v47, %s582_s25 }
  0x46   : > { %338 = vrot.lane.b32.xlu1 %v256_v46, %s582_s25  ;;  %336 = vrot.lane.b32.xlu0 %v255_v47, %s582_s25 }
  0x4a   : > { %269 = vrot.lane.b32.xlu1 %v244_v44, %s583_s26  ;;  %267 = vrot.lane.b32.xlu0 %v243_v45, %s583_s26 }
  0x4e   : > { %346 = vrot.lane.b32.xlu1 %v244_v44, %s583_s26  ;;  %344 = vrot.lane.b32.xlu0 %v243_v45, %s583_s26 }
  0x52   : > { %277 = vrot.lane.b32.xlu1 %v309_v43, %s584_s27  ;;  %275 = vrot.lane.b32.xlu0 %v308_v42, %s584_s27 }
  0x56   : > { %354 = vrot.lane.b32.xlu1 %v309_v43, %s584_s27  ;;  %352 = vrot.lane.b32.xlu0 %v308_v42, %s584_s27 }
  0x5a   : > { %287 = vrot.lane.b32.xlu1 %v661_v48, %s585_s28  ;;  %285 = vrot.lane.b32.xlu0 %v663_v49, %s585_s28 }
  0x5e   : > { %364 = vrot.lane.b32.xlu1 %v661_v48, %s585_s28  ;;  %362 = vrot.lane.b32.xlu0 %v663_v49, %s585_s28 }
  0x62   : > { %168 = vrot.lane.b32.xlu1 %v309_v43, %s580_s23  ;;  %166 = vrot.lane.b32.xlu0 %v308_v42, %s580_s23 }
  0x66   : > { %180 = vrot.lane.b32.xlu1 %v244_v44, %s581_s24  ;;  %178 = vrot.lane.b32.xlu0 %v243_v45, %s581_s24 }
  0x6a   : > { %192 = vrot.lane.b32.xlu1 %v256_v46, %s582_s25  ;;  %190 = vrot.lane.b32.xlu0 %v255_v47, %s582_s25 }
  0x6e   : > { %200 = vrot.lane.b32.xlu1 %v244_v44, %s583_s26  ;;  %198 = vrot.lane.b32.xlu0 %v243_v45, %s583_s26 }
  0x72   : > { %208 = vrot.lane.b32.xlu1 %v309_v43, %s584_s27  ;;  %206 = vrot.lane.b32.xlu0 %v308_v42, %s584_s27 }
  0x76   : > { %218 = vrot.lane.b32.xlu1 %v661_v48, %s585_s28  ;;  %216 = vrot.lane.b32.xlu0 %v663_v49, %s585_s28 }
  0xa4   : > { %v313_v50 = vpop.permute.xlu1 %312  ;;  %v236_v51 = vpop.permute.xlu0 %235 }
  0xa5   : > { %v241_v2 = vadd.f32 %v236_v51, %v663_v49  ;;  %v318_v8 = vadd.f32 %v313_v50, %v663_v49 }
  0xa8   : > { %v315_v52 = vpop.permute.xlu1 %314  ;;  %v238_v53 = vpop.permute.xlu0 %237 }
  0xa9   : > { %v242_v3 = vadd.f32 %v238_v53, %v661_v48  ;;  %v319_v9 = vadd.f32 %v315_v52, %v661_v48 }
  0xac   : > { %v250_v54 = vpop.permute.xlu1 %249  ;;  %v248_v55 = vpop.permute.xlu0 %247 }
  0xad   : > { %v254_v6 = vadd.f32 %v250_v54, %v242_v3  ;;  %v253_v7 = vadd.f32 %v248_v55, %v241_v2 }
  0xb0   : > { %v327_v56 = vpop.permute.xlu1 %326  ;;  %v325_v57 = vpop.permute.xlu0 %324 }
  0xb1   : > { %v331_v14 = vadd.f32 %v327_v56, %v319_v9  ;;  %v330_v15 = vadd.f32 %v325_v57, %v318_v8 }
  0xb4   : > { %v262_v58 = vpop.permute.xlu1 %261  ;;  %v260_v59 = vpop.permute.xlu0 %259 }
  0xb5   : > { %v266_v10 = vadd.f32 %v262_v58, %v254_v6  ;;  %v265_v11 = vadd.f32 %v260_v59, %v253_v7 }
  0xb8   : > { %v339_v60 = vpop.permute.xlu1 %338  ;;  %v337_v61 = vpop.permute.xlu0 %336 }
  0xb9   : > { %v343_v18 = vadd.f32 %v339_v60, %v331_v14  ;;  %v342_v19 = vadd.f32 %v337_v61, %v330_v15 }
  0xbc   : > { %v270_v62 = vpop.permute.xlu1 %269  ;;  %v268_v63 = vpop.permute.xlu0 %267 }
  0xbd   : > { %v274_v16 = vadd.f32 %v270_v62, %v266_v10  ;;  %v273_v17 = vadd.f32 %v268_v63, %v265_v11 }
  0xc0   : > { %v347_v0 = vpop.permute.xlu1 %346  ;;  %v345_v1 = vpop.permute.xlu0 %344 }
  0xc1   : > { %v351_v24 = vadd.f32 %v347_v0, %v343_v18  ;;  %v350_v25 = vadd.f32 %v345_v1, %v342_v19 }
  0xc4   : > { %v278_v4 = vpop.permute.xlu1 %277  ;;  %v276_v5 = vpop.permute.xlu0 %275 }
  0xc5   : > { %v282_v20 = vadd.f32 %v278_v4, %v274_v16  ;;  %v281_v21 = vadd.f32 %v276_v5, %v273_v17 }
  0xc8   : > { %v355_v12 = vpop.permute.xlu1 %354  ;;  %v353_v13 = vpop.permute.xlu0 %352 }
  0xc9   : > { %v359_v28 = vadd.f32 %v355_v12, %v351_v24  ;;  %v358_v29 = vadd.f32 %v353_v13, %v350_v25 }
  0xcc   : > { %v288_v22 = vpop.permute.xlu1 %287  ;;  %v286_v23 = vpop.permute.xlu0 %285 }
  0xcd   : > { %v292_v26 = vadd.f32 %v288_v22, %v282_v20  ;;  %v291_v27 = vadd.f32 %v286_v23, %v281_v21 }
  0xcf   : > { %297 = vrot.lane.b32.xlu1 %v292_v26, %s585_s28  ;;  %295 = vrot.lane.b32.xlu0 %v291_v27, %s585_s28 }
  0xd0   : > { %v365_v30 = vpop.permute.xlu1 %364  ;;  %v363_v31 = vpop.permute.xlu0 %362 }
  0xd1   : > { %v369_v32 = vadd.f32 %v365_v30, %v359_v28  ;;  %v368_v33 = vadd.f32 %v363_v31, %v358_v29 }
  0xd3   : > { %374 = vrot.lane.b32.xlu1 %v369_v32, %s586_s29  ;;  %372 = vrot.lane.b32.xlu0 %v368_v33, %s586_s29 }
  0xd4   : > { %v169_v34 = vpop.permute.xlu1 %168  ;;  %v167_v35 = vpop.permute.xlu0 %166 }
  0xd5   : > { %v173_v36 = vadd.f32 %v661_v48, %v169_v34  ;;  %v172_v37 = vadd.f32 %v663_v49, %v167_v35 }
  0xd8   : > { %v181_v38 = vpop.permute.xlu1 %180  ;;  %v179_v39 = vpop.permute.xlu0 %178 }
  0xd9   : > { %v185_v40 = vadd.f32 %v181_v38, %v173_v36  ;;  %v184_v41 = vadd.f32 %v179_v39, %v172_v37 }
  0xdc   : > { %v193_v42 = vpop.permute.xlu1 %192  ;;  %v191_v43 = vpop.permute.xlu0 %190 }
  0xdd   : > { %v197_v44 = vadd.f32 %v193_v42, %v185_v40  ;;  %v196_v45 = vadd.f32 %v191_v43, %v184_v41 }
  0xe0   : > { %v201_v46 = vpop.permute.xlu1 %200  ;;  %v199_v47 = vpop.permute.xlu0 %198 }
  0xe1   : > { %v205_v50 = vadd.f32 %v201_v46, %v197_v44  ;;  %v204_v51 = vadd.f32 %v199_v47, %v196_v45 }
  0xe4   : > { %v209_v52 = vpop.permute.xlu1 %208  ;;  %v207_v53 = vpop.permute.xlu0 %206 }
  0xe5   : > { %v213_v54 = vadd.f32 %v209_v52, %v205_v50  ;;  %v212_v48 = vadd.f32 %v207_v53, %v204_v51 }
  0xe8   : > { %v219_v49 = vpop.permute.xlu1 %218  ;;  %v217_v55 = vpop.permute.xlu0 %216 }
  0xe9   : > { %v223_v56 = vadd.f32 %v219_v49, %v213_v54  ;;  %v222_v57 = vadd.f32 %v217_v55, %v212_v48 }
  0xeb   : > { %226 = vst.msk [vmem:[%s109_s3 + $0x8] sm:$0xff] %vm224_vm1, %v223_v56  ;;  %225 = vst.msk [vmem:[%s109_s3] sm:$0xff] %vm224_vm1, %v222_v57 }
 0x141   : > { %v298_v58 = vpop.permute.xlu1 %297  ;;  %v296_v59 = vpop.permute.xlu0 %295 }
 0x142   : > { %303 = vst.msk [vmem:[%s109_s3 + $0x8] sm:$0xff] %vm301_vm2, %v298_v58  ;;  %302 = vst.msk [vmem:[%s109_s3] sm:$0xff] %vm301_vm2, %v296_v59 }
 0x145   : > { %v375_v60 = vpop.permute.xlu1 %374  ;;  %v373_v61 = vpop.permute.xlu0 %372 }
 0x146   : > { %380 = vst.msk [vmem:[%s109_s3 + $0x8] sm:$0xff] %vm378_vm3, %v375_v60  ;;  %379 = vst.msk [vmem:[%s109_s3] sm:$0xff] %vm378_vm3, %v373_v61 }
 0x147   : > { %531 = shalt.err (!%p528_p3)
}
 0x148   : > { %s532_s22 = scalar_lea.hbm %s694_s14, 256  ;;  %s536_s25 = scalar_lea.hbm %s739_s1, 512 }
 0x149   : > { %p533_p4 = scmp.ne.s32.totalorder %s694_s14, %s532_s22  ;;  %p537_p9 = scmp.lt.s32.totalorder %s694_s14, %s739_s1 }
 0x14a   : > { %p538_p10 = scmp.lt.s32.totalorder %s536_s25, %s532_s22 }
 0x14b   : > { %p534_p7 = pnand %p533_p4, %p638_p5 }
 0x14c   : > { %p539_p11 = por %p538_p10, %p537_p9 }
 0x14d   : > { %p535_p8 = pneg %p534_p7 }
 0x14f   : > { %p540_p12 = pnand %p539_p11, %p535_p8 }
 0x151   : > { %543 = shalt.err (!%p540_p12)
}
 0x152   : > { %s588_s28 = smov 128   ;;  %s589_s29 = smov 8  }
 0x153   : > { %470 = dma.vmem_to_hbm [thread:$0]  (%p638_p5), %s696_s5, 256, %s694_s14, %s698_s10, %s588_s28, %s588_s28, %s589_s29  }
 0x154 PF: > { %p476_p13 = scmp.ge.s32.totalorder %s578_s9, 2  ;;  %s410_s30 = sand.u32 1, %s566_s6  }
 0x155   : > { %s411_s2 = scalar_lea.sflag [#allocation4], %s410_s30 }
 0x156   : > { %p473_p0 = pnand %p476_p13, %p642_p6 }
 0x158   : > { %p474_p1 = pneg %p473_p0 }
 0x15a   : > { %561 = dma.done.wait (%p474_p1), %s411_s2, 256  }
 0x15b   : > { %563 = vsyncadd (%p474_p1), %s411_s2, 4294967040  ;;  %p11_p2 = scmp.ge.s32.totalorder %s625_s12, 4   ;;  %s742_s6 = smov %s570_s7 }
 0x15c   : > { %s743_s7 = smov %s574_s8  ;;  %s744_s8 = smov %s636_s15 }
 0x15d   : > { %s745_s9 = smov %s625_s12  ;;  %13 = sbr.rel (!%p11_p2) target bundleno = 3 (0x3), region = 59 }
 0x162   :  { %416 = vsyncpa [#allocation4], 1 }
 0x163   :  { %418 = vsyncpa [#allocation4 + $0x1], 1 }

</bundles_post_ra>
